<compile_context>
chip_gen: v6e
topology: v6e:2x2x1
jax: 0.10.0
libtpu: 0.0.40
codegen_flags: <defaults>
</compile_context>

<pallas_src>
import functools

import jax
import jax.numpy as jnp
from jax.experimental import pallas as pl
from jax.experimental.pallas import tpu as pltpu

# config.FOCAL_GAMMA is unknown at translation time; fixed deterministically here.
FOCAL_GAMMA = 2.0

_LANE = 128
_SUBLANE = 8
# 4096 x 128 f32 = 2 MiB per input per pipeline buffer -> 3 inputs x 2 buffers
# = 12 MiB VMEM: safe on v5e (16 MiB scoped default), v6e and v7x, while
# keeping per-step DMA large enough to stay near HBM roofline.
_MAX_TILE_ROWS = 4096


def _round_up(v, m):
    return pl.cdiv(v, m) * m


def _static_pow(base, gamma):
    """(1 - pt) ** gamma with small integer gammas specialized to multiplies."""
    g = float(gamma)
    if g == int(g) and 0 <= int(g) <= 4:
        gi = int(g)
        if gi == 0:
            return jnp.ones_like(base)
        out = base
        for _ in range(gi - 1):
            out = out * base
        return out
    # Non-integer gamma: clamp so fp rounding (pt slightly > 1 when bce
    # underflows to a tiny negative) cannot make power() return NaN.
    return jnp.power(jnp.maximum(base, 0.0), g)


def _masked_focal_kernel(logits_ref, targets_ref, mask_ref,
                         loss_part_ref, mask_part_ref, *, gamma, total_rows):
    p = pl.program_id(0)
    s = pl.program_id(1)
    steps = pl.num_programs(1)

    # Zero the resident per-slice partial-sum blocks at the start of each
    # parallel slice's row sweep.
    @pl.when(s == 0)
    def _():
        loss_part_ref[...] = jnp.zeros_like(loss_part_ref)
        mask_part_ref[...] = jnp.zeros_like(mask_part_ref)

    tile_rows = logits_ref.shape[0]
    # Nominal (unclamped) tile index -> global row ids for this tile. Rows at
    # or beyond `total_rows` are either garbage from a partial boundary block
    # or duplicated data from a clamped overshoot tile; both are zeroed below.
    base_row = (p * steps + s) * tile_rows
    row_ids = base_row + jax.lax.broadcasted_iota(jnp.int32, (tile_rows, _LANE), 0)
    valid = row_ids < total_rows

    x = logits_ref[...].astype(jnp.float32)
    t = targets_ref[...].astype(jnp.float32)
    m = mask_ref[...].astype(jnp.float32)

    # Numerically-stable binary_cross_entropy_with_logits (reduction='none',
    # weight=None == alpha=None in the reference module):
    #   bce = max(x, 0) - x * t + log(1 + exp(-|x|))
    bce = jnp.maximum(x, 0.0) - x * t + jnp.log1p(jnp.exp(-jnp.abs(x)))
    # TODO(synk): on v7x (EUP can become the binding slot at 3.2 TB/s) and
    # strictly-binary targets this exp can be replaced with a select plus an
    # approx reciprocal of the already-computed exp(-|x|); kept exact/general.
    pt = jnp.exp(-bce)
    focal = _static_pow(1.0 - pt, gamma) * bce

    # Select (not multiply) so NaN/Inf from invalid rows can never leak into
    # the accumulators.
    loss_c = jnp.where(valid, focal * m, 0.0)
    mask_c = jnp.where(valid, m, 0.0)

    # Reduce the (tile_rows, 128) tile down to (8, 128) per-lane partials with
    # pure VPU adds (free under the DMA); the expensive cross-lane reduce
    # happens once in the wrapper on tiny (num_parallel, 8, 128) outputs.
    loss_part_ref[...] += loss_c.reshape(tile_rows // _SUBLANE, _SUBLANE, _LANE).sum(axis=0)
    mask_part_ref[...] += mask_c.reshape(tile_rows // _SUBLANE, _SUBLANE, _LANE).sum(axis=0)


def masked_focal_loss(logits, targets, mask, *, gamma=FOCAL_GAMMA,
                      reduction="mean"):
    """Pallas TPU implementation of MaskedFocalLoss.forward (alpha=None)."""
    # TODO(synk): alpha (per-element BCE weight) is None in the default config;
    # a non-None alpha would just be one extra elementwise multiply on `bce`.
    assert logits.shape == targets.shape == mask.shape

    n = logits.size
    x = jnp.ravel(logits)
    t = jnp.ravel(targets)
    m = jnp.ravel(mask)

    rows = pl.cdiv(n, _LANE)            # number of valid 128-wide rows
    pad = rows * _LANE - n
    if pad:
        # Only when n is not a multiple of 128: pad the flat arrays up to the
        # next lane boundary so the (rows, 128) reshape is free. Padded mask
        # entries are 0 so they contribute to neither sum (padded logits=0
        # keep bce finite).
        # TODO(synk): a fully copy-free ragged-lane path would need a 1-D
        # block layout; not worth the lowering risk for a <=127-element tail.
        x = jnp.pad(x, (0, pad))
        t = jnp.pad(t, (0, pad))
        m = jnp.pad(m, (0, pad))

    x2 = x.reshape(rows, _LANE)
    t2 = t.reshape(rows, _LANE)
    m2 = m.reshape(rows, _LANE)

    # Tile rows rounded to 32 so narrow input dtypes (bf16/int8/bool) also
    # satisfy the sublane-tiling minimum. No row padding of the arrays:
    # boundary blocks are partial and masked in-kernel.
    tile_rows = min(_MAX_TILE_ROWS, _round_up(rows, 32))
    total_tiles = pl.cdiv(rows, tile_rows)
    # 2 parallel slices whenever there are >= 2 tiles: shards the sweep across
    # both TensorCores on megacore parts (v7x); harmless on single-TC chips.
    num_parallel = 2 if total_tiles >= 2 else 1
    steps = pl.cdiv(total_tiles, num_parallel)

    def tile_index_map(p, s):
        # Clamp so overshoot tiles (total_tiles % num_parallel != 0) DMA
        # in-bounds data; their contribution is zeroed in-kernel via the
        # nominal row-id mask.
        return (jnp.minimum(p * steps + s, total_tiles - 1), 0)

    tile_spec = pl.BlockSpec((tile_rows, _LANE), tile_index_map)
    part_spec = pl.BlockSpec((None, _SUBLANE, _LANE), lambda p, s: (p, 0, 0))
    part_shape = jax.ShapeDtypeStruct((num_parallel, _SUBLANE, _LANE),
                                      jnp.float32)

    bytes_accessed = (x2.size * x2.dtype.itemsize
                      + t2.size * t2.dtype.itemsize
                      + m2.size * m2.dtype.itemsize
                      + 2 * num_parallel * _SUBLANE * _LANE * 4)
    cost = pl.CostEstimate(flops=15 * n, transcendentals=3 * n,
                           bytes_accessed=bytes_accessed)

    loss_part, mask_part = pl.pallas_call(
        functools.partial(_masked_focal_kernel, gamma=float(gamma),
                          total_rows=rows),
        out_shape=(part_shape, part_shape),
        grid_spec=pltpu.PrefetchScalarGridSpec(
            num_scalar_prefetch=0,
            grid=(num_parallel, steps),
            in_specs=[tile_spec, tile_spec, tile_spec],
            out_specs=[part_spec, part_spec],
        ),
        compiler_params=pltpu.CompilerParams(
            dimension_semantics=("parallel", "arbitrary"),
            vmem_limit_bytes=48 * 1024 * 1024),
        cost_estimate=cost,
    )(x2, t2, m2)

    loss_sum = jnp.sum(loss_part)
    mask_sum = jnp.sum(mask_part)
    if reduction == "mean":
        return loss_sum / (mask_sum + 1e-6)
    return loss_sum


def _reference(logits, targets, mask, gamma=FOCAL_GAMMA, reduction="mean"):
    x = logits.astype(jnp.float32)
    t = targets.astype(jnp.float32)
    m = mask.astype(jnp.float32)
    bce = jnp.maximum(x, 0.0) - x * t + jnp.log1p(jnp.exp(-jnp.abs(x)))
    pt = jnp.exp(-bce)
    loss = (1.0 - pt) ** gamma * bce
    loss = loss * m
    if reduction == "mean":
        return loss.sum() / (m.sum() + 1e-6)
    return loss.sum()


if __name__ == "__main__":
    key = jax.random.PRNGKey(0)
    k1, k2, k3 = jax.random.split(key, 3)

    # Small NCHW-shaped inputs (logits / targets / mask all same shape).
    shape = (2, 4, 16, 16)
    logits = jax.random.normal(k1, shape, dtype=jnp.float32) * 2.0
    targets = (jax.random.uniform(k2, shape) > 0.5).astype(jnp.float32)
    mask = (jax.random.uniform(k3, shape) > 0.3).astype(jnp.float32)

    out = jax.block_until_ready(masked_focal_loss(logits, targets, mask))
    ref = _reference(logits, targets, mask)
    assert jnp.allclose(out, ref, rtol=1e-5, atol=1e-5), (out, ref)

    # Non-lane-aligned (ragged tail) path with an odd shape.
    shape2 = (3, 5, 17, 19)
    l2 = jax.random.normal(k1, shape2, dtype=jnp.float32) * 2.0
    t2 = (jax.random.uniform(k2, shape2) > 0.5).astype(jnp.float32)
    m2 = (jax.random.uniform(k3, shape2) > 0.3).astype(jnp.float32)
    out2 = jax.block_until_ready(masked_focal_loss(l2, t2, m2))
    ref2 = _reference(l2, t2, m2)
    assert jnp.allclose(out2, ref2, rtol=1e-5, atol=1e-5), (out2, ref2)

    # Multi-tile path: 3 tiles of 4096 rows -> exercises the parallel axis,
    # the partial boundary tile and the clamped overshoot tile.
    shape3 = (4, 4, 288, 288)
    l3 = jax.random.normal(k1, shape3, dtype=jnp.float32) * 2.0
    t3 = (jax.random.uniform(k2, shape3) > 0.5).astype(jnp.float32)
    m3 = (jax.random.uniform(k3, shape3) > 0.3).astype(jnp.float32)
    out3 = jax.block_until_ready(masked_focal_loss(l3, t3, m3))
    ref3 = _reference(l3, t3, m3)
    assert jnp.allclose(out3, ref3, rtol=1e-4, atol=1e-6), (out3, ref3)

    print("KERNEL_OK")
</pallas_src>

<mosaic_0001>
module attributes {stable_mosaic.version = 11 : i64} {
  func.func @_masked_focal_kernel(%arg0: i32, %arg1: i32, %arg2: memref<32x128xf32, #tpu.memory_space<vmem>>, %arg3: memref<32x128xf32, #tpu.memory_space<vmem>>, %arg4: memref<32x128xf32, #tpu.memory_space<vmem>>, %arg5: memref<1x8x128xf32, #tpu.memory_space<vmem>>, %arg6: memref<1x8x128xf32, #tpu.memory_space<vmem>>) attributes {dimension_semantics = [#tpu.dimension_semantics<parallel>, #tpu.dimension_semantics<arbitrary>], iteration_bounds = array<i64: 1, 1>, scalar_prefetch = 0 : i64, scratch_operands = 0 : i64, tpu.core_type = #tpu.core_type<tc>, window_params = [{transform_indices = @transform_0, window_bounds = array<i64: 32, 128>}, {transform_indices = @transform_1, window_bounds = array<i64: 32, 128>}, {transform_indices = @transform_2, window_bounds = array<i64: 32, 128>}, {transform_indices = @transform_3, window_bounds = array<i64: 1, 8, 128>}, {transform_indices = @transform_4, window_bounds = array<i64: 1, 8, 128>}]} {
    %c0_i32 = arith.constant 0 : i32
    %0 = arith.cmpi eq, %arg1, %c0_i32 : i32
    %1 = arith.extui %0 : i1 to i32
    %c0_i32_0 = arith.constant 0 : i32
    %2 = arith.cmpi ne, %1, %c0_i32_0 : i32
    scf.if %2 {
      %cst_25 = arith.constant 0.000000e+00 : f32
      %52 = vector.broadcast %cst_25 : f32 to vector<8x128xf32>
      %c0_26 = arith.constant 0 : index
      %c0_27 = arith.constant 0 : index
      %c0_28 = arith.constant 0 : index
      %53 = vector.load %arg5[%c0_26, %c0_27, %c0_28] : memref<1x8x128xf32, #tpu.memory_space<vmem>>, vector<1x8x128xf32>
      %54 = vector.shape_cast %53 : vector<1x8x128xf32> to vector<8x128xf32>
      %55 = vector.shape_cast %52 : vector<8x128xf32> to vector<1x8x128xf32>
      tpu.vector_store %arg5[%c0_26, %c0_27, %c0_28], %55 {strides = array<i32>} : memref<1x8x128xf32, #tpu.memory_space<vmem>>, vector<1x8x128xf32>,
      %cst_29 = arith.constant 0.000000e+00 : f32
      %56 = vector.broadcast %cst_29 : f32 to vector<8x128xf32>
      %c0_30 = arith.constant 0 : index
      %c0_31 = arith.constant 0 : index
      %c0_32 = arith.constant 0 : index
      %57 = vector.load %arg6[%c0_30, %c0_31, %c0_32] : memref<1x8x128xf32, #tpu.memory_space<vmem>>, vector<1x8x128xf32>
      %58 = vector.shape_cast %57 : vector<1x8x128xf32> to vector<8x128xf32>
      %59 = vector.shape_cast %56 : vector<8x128xf32> to vector<1x8x128xf32>
      tpu.vector_store %arg6[%c0_30, %c0_31, %c0_32], %59 {strides = array<i32>} : memref<1x8x128xf32, #tpu.memory_space<vmem>>, vector<1x8x128xf32>,
    } else {
    }
    %c1_i32 = arith.constant 1 : i32
    %3 = arith.muli %arg0, %c1_i32 : i32
    %4 = arith.addi %3, %arg1 : i32
    %c32_i32 = arith.constant 32 : i32
    %5 = arith.muli %4, %c32_i32 : i32
    %6 = tpu.iota {dimensions = array<i32: 0>} : vector<32x128xi32>
    %7 = vector.broadcast %5 : i32 to vector<32x128xi32>
    %8 = arith.addi %7, %6 : vector<32x128xi32>
    %c16_i32 = arith.constant 16 : i32
    %9 = vector.broadcast %c16_i32 : i32 to vector<32x128xi32>
    %10 = arith.cmpi slt, %8, %9 : vector<32x128xi32>
    %c0 = arith.constant 0 : index
    %c0_1 = arith.constant 0 : index
    %11 = vector.load %arg2[%c0, %c0_1] : memref<32x128xf32, #tpu.memory_space<vmem>>, vector<32x128xf32>
    %c0_2 = arith.constant 0 : index
    %c0_3 = arith.constant 0 : index
    %12 = vector.load %arg3[%c0_2, %c0_3] : memref<32x128xf32, #tpu.memory_space<vmem>>, vector<32x128xf32>
    %c0_4 = arith.constant 0 : index
    %c0_5 = arith.constant 0 : index
    %13 = vector.load %arg4[%c0_4, %c0_5] : memref<32x128xf32, #tpu.memory_space<vmem>>, vector<32x128xf32>
    %cst = arith.constant 0.000000e+00 : f32
    %14 = vector.broadcast %cst : f32 to vector<32x128xf32>
    %15 = arith.maximumf %11, %14 : vector<32x128xf32>
    %16 = arith.mulf %11, %12 : vector<32x128xf32>
    %17 = arith.subf %15, %16 : vector<32x128xf32>
    %18 = math.absf %11 : vector<32x128xf32>
    %cst_6 = arith.constant 0.000000e+00 : f32
    %19 = vector.broadcast %cst_6 : f32 to vector<32x128xf32>
    %20 = arith.subf %19, %18 : vector<32x128xf32>
    %21 = math.exp %20 : vector<32x128xf32>
    %22 = math.log1p %21 : vector<32x128xf32>
    %23 = arith.addf %17, %22 : vector<32x128xf32>
    %cst_7 = arith.constant 0.000000e+00 : f32
    %24 = vector.broadcast %cst_7 : f32 to vector<32x128xf32>
    %25 = arith.subf %24, %23 : vector<32x128xf32>
    %26 = math.exp %25 : vector<32x128xf32>
    %cst_8 = arith.constant 1.000000e+00 : f32
    %27 = vector.broadcast %cst_8 : f32 to vector<32x128xf32>
    %28 = arith.subf %27, %26 : vector<32x128xf32>
    %29 = arith.mulf %28, %28 : vector<32x128xf32>
    %30 = arith.mulf %29, %23 : vector<32x128xf32>
    %31 = arith.mulf %30, %13 : vector<32x128xf32>
    %cst_9 = arith.constant 0.000000e+00 : f32
    %32 = vector.broadcast %cst_9 : f32 to vector<32x128xf32>
    %33 = arith.select %10, %31, %32 : vector<32x128xi1>, vector<32x128xf32>
    %cst_10 = arith.constant 0.000000e+00 : f32
    %34 = vector.broadcast %cst_10 : f32 to vector<32x128xf32>
    %35 = arith.select %10, %13, %34 : vector<32x128xi1>, vector<32x128xf32>
    %c0_11 = arith.constant 0 : index
    %c0_12 = arith.constant 0 : index
    %c0_13 = arith.constant 0 : index
    %36 = vector.load %arg5[%c0_11, %c0_12, %c0_13] : memref<1x8x128xf32, #tpu.memory_space<vmem>>, vector<1x8x128xf32>
    %37 = vector.shape_cast %36 : vector<1x8x128xf32> to vector<8x128xf32>
    %38 = vector.shape_cast %33 : vector<32x128xf32> to vector<4x8x128xf32>
    %cst_14 = arith.constant dense<0.000000e+00> : vector<8x128xf32>
    %39 = vector.multi_reduction <add>, %38, %cst_14 [0] : vector<4x8x128xf32> to vector<8x128xf32>
    %40 = arith.addf %37, %39 : vector<8x128xf32>
    %c0_15 = arith.constant 0 : index
    %c0_16 = arith.constant 0 : index
    %c0_17 = arith.constant 0 : index
    %41 = vector.load %arg5[%c0_15, %c0_16, %c0_17] : memref<1x8x128xf32, #tpu.memory_space<vmem>>, vector<1x8x128xf32>
    %42 = vector.shape_cast %41 : vector<1x8x128xf32> to vector<8x128xf32>
    %43 = vector.shape_cast %40 : vector<8x128xf32> to vector<1x8x128xf32>
    tpu.vector_store %arg5[%c0_15, %c0_16, %c0_17], %43 {strides = array<i32>} : memref<1x8x128xf32, #tpu.memory_space<vmem>>, vector<1x8x128xf32>,
    %c0_18 = arith.constant 0 : index
    %c0_19 = arith.constant 0 : index
    %c0_20 = arith.constant 0 : index
    %44 = vector.load %arg6[%c0_18, %c0_19, %c0_20] : memref<1x8x128xf32, #tpu.memory_space<vmem>>, vector<1x8x128xf32>
    %45 = vector.shape_cast %44 : vector<1x8x128xf32> to vector<8x128xf32>
    %46 = vector.shape_cast %35 : vector<32x128xf32> to vector<4x8x128xf32>
    %cst_21 = arith.constant dense<0.000000e+00> : vector<8x128xf32>
    %47 = vector.multi_reduction <add>, %46, %cst_21 [0] : vector<4x8x128xf32> to vector<8x128xf32>
    %48 = arith.addf %45, %47 : vector<8x128xf32>
    %c0_22 = arith.constant 0 : index
    %c0_23 = arith.constant 0 : index
    %c0_24 = arith.constant 0 : index
    %49 = vector.load %arg6[%c0_22, %c0_23, %c0_24] : memref<1x8x128xf32, #tpu.memory_space<vmem>>, vector<1x8x128xf32>
    %50 = vector.shape_cast %49 : vector<1x8x128xf32> to vector<8x128xf32>
    %51 = vector.shape_cast %48 : vector<8x128xf32> to vector<1x8x128xf32>
    tpu.vector_store %arg6[%c0_22, %c0_23, %c0_24], %51 {strides = array<i32>} : memref<1x8x128xf32, #tpu.memory_space<vmem>>, vector<1x8x128xf32>,
    return
  }
  func.func @transform_0(%arg0: i32, %arg1: i32) -> (i32, i32) {
    %c1_i32 = arith.constant 1 : i32
    %0 = arith.muli %arg0, %c1_i32 : i32
    %1 = arith.addi %0, %arg1 : i32
    %c0_i32 = arith.constant 0 : i32
    %2 = arith.minsi %1, %c0_i32 : i32
    %c0_i32_0 = arith.constant 0 : i32
    %c0_i32_1 = arith.constant 0 : i32
    return %2, %c0_i32_0 : i32, i32
  }
  func.func @transform_1(%arg0: i32, %arg1: i32) -> (i32, i32) {
    %c1_i32 = arith.constant 1 : i32
    %0 = arith.muli %arg0, %c1_i32 : i32
    %1 = arith.addi %0, %arg1 : i32
    %c0_i32 = arith.constant 0 : i32
    %2 = arith.minsi %1, %c0_i32 : i32
    %c0_i32_0 = arith.constant 0 : i32
    %c0_i32_1 = arith.constant 0 : i32
    return %2, %c0_i32_0 : i32, i32
  }
  func.func @transform_2(%arg0: i32, %arg1: i32) -> (i32, i32) {
    %c1_i32 = arith.constant 1 : i32
    %0 = arith.muli %arg0, %c1_i32 : i32
    %1 = arith.addi %0, %arg1 : i32
    %c0_i32 = arith.constant 0 : i32
    %2 = arith.minsi %1, %c0_i32 : i32
    %c0_i32_0 = arith.constant 0 : i32
    %c0_i32_1 = arith.constant 0 : i32
    return %2, %c0_i32_0 : i32, i32
  }
  func.func @transform_3(%arg0: i32, %arg1: i32) -> (i32, i32, i32) {
    %c0_i32 = arith.constant 0 : i32
    %c0_i32_0 = arith.constant 0 : i32
    %c0_i32_1 = arith.constant 0 : i32
    return %arg0, %c0_i32, %c0_i32_0 : i32, i32, i32
  }
  func.func @transform_4(%arg0: i32, %arg1: i32) -> (i32, i32, i32) {
    %c0_i32 = arith.constant 0 : i32
    %c0_i32_0 = arith.constant 0 : i32
    %c0_i32_1 = arith.constant 0 : i32
    return %arg0, %c0_i32, %c0_i32_0 : i32, i32, i32
  }
}

</mosaic_0001>

<bundles_post_ra>
// kernel: tpu_custom_call.1
= control target key start
LH: loop header
LB: loop body
LE: loop exit
PB: predicated region body
PF: predicated region fallthrough
CT: control target
= control target key end

     0   :  { %10 = vsyncpa [#allocation3], 0  ;;  %s485_s0 = inlined_call_operand.hbm [shape: f32[16,128], index: 0, kind: input, shape index: {}]   ;;  %s486_s1 = inlined_call_operand.hbm [shape: f32[16,128], index: 1, kind: input, shape index: {}]   ;;  %s487_s2 = inlined_call_operand.hbm [shape: f32[16,128], index: 2, kind: input, shape index: {}]   ;;  %s488_s3 = inlined_call_operand.hbm [shape: f32[1,8,128], index: 3, kind: output, shape index: {0}]   ;;  %s489_s4 = inlined_call_operand.hbm [shape: f32[1,8,128], index: 4, kind: output, shape index: {1}]  }
   0x1   :  { %11 = vsyncpa [#allocation6], 0 }
   0x2   :  { %12 = vsyncpa [#allocation4], 0 }
   0x3   :  { %13 = vsyncpa [#allocation10], 0 }
   0x4   :  { %24 = vsyncadd [#allocation3], 256  ;;  %s421_s15 = smov [#allocation2]  }
   0x5   :  { %s29_s16 = sshll.u32 %s421_s15, 4  ;;  %s30_s16 = int_to_ptr.vmem [resolvable:$true] %s29_s16 }
   0x6   :  { %s321_s17 = scalar_lea.vmem %s30_s16, 256  ;;  %s325_s18 = scalar_lea.vmem %s30_s16, 512 }
   0x7   :  { %p322_p0 = scmp.ne.s32.totalorder %s30_s16, %s321_s17  ;;  %p326_p1 = scmp.lt.s32.totalorder %s30_s16, %s30_s16 }
   0x8   :  { %p327_p2 = scmp.lt.s32.totalorder %s325_s18, %s321_s17 }
   0xa   :  { %p328_p3 = por %p327_p2, %p326_p1 }
   0xc   :  { %p329_p4 = pnand %p328_p3, %p322_p0 }
   0xe   :  { %332 = shalt.err (!%p329_p4)
}
   0xf   :  { %s422_s19 = smov 128   ;;  %s423_s20 = smov 8  }
  0x10   :  { %35 = dma.hbm_to_vmem [thread:$0]  %s485_s0, 256, %s30_s16, [#allocation3], %s422_s19, %s422_s19, %s423_s20  }
  0x11   :  { %46 = vsyncadd [#allocation6], 256  ;;  %s424_s23 = smov [#allocation5]  }
  0x12   :  { %s51_s24 = sshll.u32 %s424_s23, 4  ;;  %s52_s24 = int_to_ptr.vmem [resolvable:$true] %s51_s24 }
  0x13   :  { %s341_s25 = scalar_lea.vmem %s52_s24, 256  ;;  %s345_s26 = scalar_lea.vmem %s52_s24, 512 }
  0x14   :  { %p342_p5 = scmp.ne.s32.totalorder %s52_s24, %s341_s25  ;;  %p346_p6 = scmp.lt.s32.totalorder %s52_s24, %s52_s24 }
  0x15   :  { %p347_p7 = scmp.lt.s32.totalorder %s345_s26, %s341_s25 }
  0x17   :  { %p348_p8 = por %p347_p7, %p346_p6 }
  0x19   :  { %p349_p9 = pnand %p348_p8, %p342_p5 }
  0x1b   :  { %352 = shalt.err (!%p349_p9)
}
  0x1c   :  { %57 = dma.hbm_to_vmem [thread:$0]  %s486_s1, 256, %s52_s24, [#allocation6], %s422_s19, %s422_s19, %s423_s20  }
  0x1d   :  { %68 = vsyncadd [#allocation6], 256  ;;  %s425_s0 = smov [#allocation7]  }
  0x1e   :  { %s73_s29 = sshll.u32 %s425_s0, 4  ;;  %s74_s29 = int_to_ptr.vmem [resolvable:$true] %s73_s29 }
  0x1f   :  { %s361_s30 = scalar_lea.vmem %s74_s29, 256  ;;  %s365_s5 = scalar_lea.vmem %s74_s29, 512 }
  0x20   :  { %p362_p10 = scmp.ne.s32.totalorder %s74_s29, %s361_s30  ;;  %p366_p11 = scmp.lt.s32.totalorder %s74_s29, %s74_s29 }
  0x21   :  { %p367_p12 = scmp.lt.s32.totalorder %s365_s5, %s361_s30 }
  0x23   :  { %p368_p13 = por %p367_p12, %p366_p11 }
  0x25   :  { %p369_p0 = pnand %p368_p13, %p362_p10 }
  0x27   :  { %372 = shalt.err (!%p369_p0)
}
  0x28   :  { %79 = dma.hbm_to_vmem [thread:$0]  %s487_s2, 256, %s74_s29, [#allocation6], %s422_s19, %s422_s19, %s423_s20  }
  0x29   :  { %413 = dma.done.wait [#allocation3], 512  }
  0x2a   :  { %414 = vsyncadd [#allocation3], 4294966784 }
  0x2b   :  { %415 = dma.done.wait [#allocation6], 1024  }
  0x2c   :  { %416 = vsyncadd [#allocation6], 4294966272  ;;  %v129_v0 = vld [vmem:[#allocation2] sm:$0xff]  ;;  %v130_v1 = vld [vmem:[#allocation2 + $0x8] sm:$0xff]  ;;  %s426_s1 = smov [#allocation9]  }
  0x2d   :  { %v471_v2 = vld [vmem:[#allocation7] sm:$0xff]  ;;  %v473_v3 = vld [vmem:[#allocation7 + $0x8] sm:$0xff]  ;;  %s273_s8 = sshll.u32 %s426_s1, 4  ;;  %v153_v4 = vand.u32 2147483647, %v129_v0  ;;  %s274_s8 = int_to_ptr.vmem [resolvable:$true] %s273_s8 }
  0x2e   :  { %v154_v5 = vand.u32 2147483647, %v130_v1  ;;  %v252_v6 = vadd.f32 %v473_v3, %v471_v2  ;;  %s373_s2 = scalar_lea.vmem %s274_s8, 128  ;;  %p378_p2 = scmp.lt.s32.totalorder %s274_s8, %s274_s8 }
  0x2f   :  { %v157_v7 = vsub.f32 0.0, %v153_v4  ;;  %p374_p1 = scmp.ne.s32.totalorder %s274_s8, %s373_s2  ;;  %p379_p3 = scmp.lt.s32.totalorder %s373_s2, %s373_s2 }
  0x30   :  { %v158_v8 = vsub.f32 0.0, %v154_v5  ;;  %256 = vst [vmem:[#allocation9] sm:$0xff] %v252_v6 }
  0x31   :  { %v161_v9 = vmul.f32 1.442695, %v157_v7  ;;  %p380_p4 = por %p379_p3, %p378_p2 }
  0x32   :  { %v163_v10 = vmul.f32 1.442695, %v158_v8 }
  0x33   :  { %p381_p5 = pnand %p380_p4, %p374_p1 }
  0x35   :  { %384 = shalt.err (!%p381_p5)
}
  0x36   :  { %276 = dma.vmem_to_hbm [thread:$0]  %s274_s8, 128, %s489_s4, [#allocation10]   ;;  %301 = vpow2.f32 %v161_v9  ;;  %v133_v17 = vld [vmem:[#allocation5] sm:$0xff]  ;;  %v134_v18 = vld [vmem:[#allocation5 + $0x8] sm:$0xff]  ;;  %v141_v20 = vmax.f32 %v129_v0, 0.0  ;;  %v142_v24 = vmax.f32 %v130_v1, 0.0 }
  0x37   :  { %303 = vpow2.f32 %v163_v10  ;;  %v145_v21 = vmul.f32 %v133_v17, %v129_v0  ;;  %v146_v25 = vmul.f32 %v134_v18, %v130_v1  ;;  %s427_s4 = smov [#allocation8]  }
  0x38   :  { %s263_s11 = sshll.u32 %s427_s4, 4  ;;  %s264_s11 = int_to_ptr.vmem [resolvable:$true] %s263_s11 }
  0x39   :  { %v149_v29 = vsub.f32 %v141_v20, %v145_v21  ;;  %v150_v32 = vsub.f32 %v142_v24, %v146_v25  ;;  %s393_s12 = scalar_lea.vmem %s264_s11, 128  ;;  %p398_p7 = scmp.lt.s32.totalorder %s264_s11, %s264_s11 }
  0x3a   :  { %p394_p6 = scmp.ne.s32.totalorder %s264_s11, %s393_s12  ;;  %p399_p8 = scmp.lt.s32.totalorder %s393_s12, %s393_s12 }
  0x3c   :  { %p400_p9 = por %p399_p8, %p398_p7 }
  0x3e   :  { %p401_p10 = pnand %p400_p9, %p394_p6 }
  0x43   :  { %v302_v11 = vpop.eup %301 }
  0x44   :  { %v304_v12 = vpop.eup %303  ;;  %v169_v13 = vadd.f32 1.0, %v302_v11  ;;  %v172_v15 = vmul.f32 -0.5, %v302_v11  ;;  %v175_v22 = vand.u32 2147483647, %v302_v11 }
  0x45   :  { %v178_v14 = vadd.f32 1.0, %v304_v12  ;;  %v181_v16 = vmul.f32 -0.5, %v304_v12  ;;  %v184_v26 = vand.u32 2147483647, %v304_v12 }
  0x46   :  { %305 = vlog2.f32 %v169_v13  ;;  %v173_v19 = vadd.f32 1.0, %v172_v15  ;;  %vm176_vm0 = vcmp.lt.f32.partialorder %v175_v22, 0.0004427343 }
  0x47   :  { %307 = vlog2.f32 %v178_v14  ;;  %v182_v23 = vadd.f32 1.0, %v181_v16  ;;  %vm185_vm1 = vcmp.lt.f32.partialorder %v184_v26, 0.0004427343 }
  0x48   :  { %v174_v27 = vmul.f32 %v302_v11, %v173_v19 }
  0x49   :  { %v183_v30 = vmul.f32 %v304_v12, %v182_v23 }
  0x53   :  { %v306_v28 = vpop.eup %305 }
  0x54   :  { %v308_v31 = vpop.eup %307  ;;  %v171_v33 = vmul.f32 0.6931472, %v306_v28 }
  0x55   :  { %v180_v34 = vmul.f32 0.6931472, %v308_v31 }
  0x56   :  { %v177_v35 = vsel %vm176_vm0, %v174_v27, %v171_v33 }
  0x57   :  { %v186_v36 = vsel %vm185_vm1, %v183_v30, %v180_v34  ;;  %v205_v37 = vadd.f32 %v177_v35, %v149_v29 }
  0x58   :  { %v206_v38 = vadd.f32 %v186_v36, %v150_v32 }
  0x59   :  { %v209_v39 = vsub.f32 0.0, %v205_v37 }
  0x5a   :  { %v210_v40 = vsub.f32 0.0, %v206_v38 }
  0x5b   :  { %v213_v41 = vmul.f32 1.442695, %v209_v39 }
  0x5c   :  { %v215_v42 = vmul.f32 1.442695, %v210_v40 }
  0x5d   :  { %309 = vpow2.f32 %v213_v41 }
  0x5e   :  { %311 = vpow2.f32 %v215_v42 }
  0x6a   :  { %v310_v43 = vpop.eup %309 }
  0x6b   :  { %v312_v44 = vpop.eup %311  ;;  %v221_v45 = vsub.f32 1.0, %v310_v43 }
  0x6c   :  { %v222_v46 = vsub.f32 1.0, %v312_v44 }
  0x6d   :  { %v225_v47 = vmul.f32 %v221_v45, %v221_v45 }
  0x6e   :  { %v226_v48 = vmul.f32 %v222_v46, %v222_v46 }
  0x6f   :  { %v229_v49 = vmul.f32 %v225_v47, %v205_v37 }
  0x70   :  { %v230_v50 = vmul.f32 %v226_v48, %v206_v38 }
  0x71   :  { %v233_v51 = vmul.f32 %v229_v49, %v471_v2 }
  0x72   :  { %v234_v52 = vmul.f32 %v230_v50, %v473_v3 }
  0x74   :  { %v246_v53 = vadd.f32 %v234_v52, %v233_v51 }
  0x76   :  { %250 = vst [vmem:[#allocation8] sm:$0xff] %v246_v53 }
  0x77   :  { %404 = shalt.err (!%p401_p10)
}
  0x78   :  { %266 = dma.vmem_to_hbm [thread:$0]  %s264_s11, 128, %s488_s3, [#allocation4]  }
  0x79   :  { %417 = dma.done.wait [#allocation4], 128  }
  0x7a   :  { %418 = vsyncadd [#allocation4], 4294967168 }
  0x7b   :  { %419 = dma.done.wait [#allocation10], 128  }
  0x7c   :  { %420 = vsyncadd [#allocation10], 4294967168 }
  0x7d   :  { %283 = vsyncpa [#allocation3], 1 }
  0x7e   :  { %284 = vsyncpa [#allocation6], 1 }
  0x7f   :  { %285 = vsyncpa [#allocation4], 1 }
  0x80   :  { %286 = vsyncpa [#allocation10], 1 }

</bundles_post_ra>
